<compile_context>
chip_gen: v7x
topology: tpu7x:2x2x1
jax: 0.10.0
libtpu: 0.0.40
codegen_flags: <defaults>
</compile_context>

<pallas_src>
import functools

import jax
import jax.numpy as jnp
from jax.experimental import pallas as pl
from jax.experimental.pallas import tpu as pltpu


def _mcross_attention_kernel(n_valid, x_ref, bdat_ref, bcast_ref, m_ref,
                             bp_ref, o_ref):
    """One grid step == block_b batch rows; all heads processed at once."""
    BT, Np, C = x_ref.shape

    x = x_ref[...]                                   # (BT, Np, C), f32 or bf16
    xf = x.astype(jnp.float32)                       # f32 copy for VPU/EUP math

    # Keys pre-rotated by the fused (scaled) wq^T wk, all heads in one matmul:
    #   kp[b, n, h*hd+d] = sum_{d'} A_s[d, d'] * x[b, n, h*hd+d']
    kp = jnp.dot(x.reshape(BT * Np, C), bdat_ref[...],
                 preferred_element_type=jnp.float32).reshape(BT, Np, C)

    # Query token (token 0); N-axis broadcast is a cheap sublane broadcast.
    x0 = xf[:, 0:1, :]                               # (BT, 1, C)
    prod = kp * x0                                   # (BT, Np, C)

    # Per-head logit, already broadcast back over that head's channels: one
    # block-diagonal (C, C) matmul replaces the old seg + segt matmul pair.
    logits = jnp.dot(prod.reshape(BT * Np, C), bcast_ref[...],
                     preferred_element_type=jnp.float32).reshape(BT, Np, C)

    if n_valid != Np:                                # static: mask padded tokens
        tok = jax.lax.broadcasted_iota(jnp.int32, (BT, Np, C), 1)
        logits = jnp.where(tok < n_valid, logits, -1e30)

    # Softmax over tokens (axis=1) in the head-broadcast layout, f32.
    mx = jnp.max(logits, axis=1, keepdims=True)      # (BT, 1, C)
    e = jnp.exp(logits - mx)
    den = jnp.sum(e, axis=1, keepdims=True)
    attn = e * pl.reciprocal(den, approx=True)       # (BT, Np, C)

    # Reduce over tokens BEFORE the fused value/proj matmul.
    w_red = jnp.sum(attn * xf, axis=1)               # (BT, C)
    y = jnp.dot(w_red, m_ref[...],
                preferred_element_type=jnp.float32) + bp_ref[...]   # (BT, dim)

    # TODO(synk): attn_drop / proj_drop (nn.Dropout) are identity (eval mode).
    o_ref[...] = y.reshape(o_ref.shape).astype(o_ref.dtype)


def fuse_mcross_weights(wq, wk, wv, wp, bp, *, num_heads):
    """One-time algebraic fusion of the weights.

    Cache the result per weight set (these are several small XLA ops you do not
    want to pay on every inference call).  PyTorch Linear layouts:
    wq/wk/wv: (dim, head_dim), wp: (dim, dim*num_heads), bp: (dim,).
    """
    f32 = jnp.float32
    dim, hd = wq.shape
    C = num_heads * hd                               # == dim for this module
    scale = float(hd) ** -0.5
    wq32, wk32, wv32, wp32 = (w.astype(f32) for w in (wq, wk, wv, wp))

    a_s = (wq32.T @ wk32) * scale                    # (hd, hd)
    eye_h = jnp.eye(num_heads, dtype=f32)
    bdat = jnp.kron(eye_h, a_s.T)                    # (C, C): key-side rotation
    bcast = jnp.kron(eye_h, jnp.ones((hd, hd), f32)) # (C, C): head bcast-sum
    m_fused = jnp.einsum('ed,ohe->hdo', wv32,
                         wp32.reshape(dim, num_heads, dim)).reshape(C, dim)
    bp2 = bp.reshape(1, dim).astype(f32)
    return bdat, bcast, m_fused, bp2


def mcross_attention_fused(x, bdat, bcast, m_fused, bp2, *, block_b=None,
                           compute_dtype=None, num_cores=1):
    """x: (B, N, C); fused weights from fuse_mcross_weights. Returns (B, 1, dim).

    num_cores: set 2 on v7x (2 TensorCores/chip) so large batches shard across
    cores; leave 1 on v5e/v6e (single TC -> grid is a serial loop).
    """
    B, N, C = x.shape
    dim = m_fused.shape[1]
    out_dtype = x.dtype

    # MXU input path runs in the caller's dtype by default.  Feed bf16 x from
    # upstream on v6e/v7x for half the HBM traffic; we do NOT default-cast
    # f32 -> bf16 here (that would be an extra full HBM pass outside the kernel).
    if compute_dtype is None:
        compute_dtype = x.dtype
    x_in = x if x.dtype == compute_dtype else x.astype(compute_dtype)
    bdat_in = bdat.astype(compute_dtype)

    # Keep the in-kernel (BT, N, C) <-> (BT*N, C) reshapes sublane-aligned:
    # pad N to a multiple of 8 and mask padded tokens (rare; avoids block_b=1).
    n_pad = -(-N // 8) * 8
    if n_pad != N:
        x_in = jnp.pad(x_in, ((0, 0), (0, n_pad - N), (0, 0)))

    # ---- batch tiling: few, fat grid steps ---------------------------------
    row_elems = n_pad * C
    itemsize = jnp.dtype(x_in.dtype).itemsize
    if block_b is None:
        target_bb = max(1, (1 << 20) // (row_elems * itemsize))   # ~1 MiB slab
        cap_bb = max(1, (1 << 21) // (row_elems * 4))             # f32 temp cap
        block_b = min(B, target_bb, cap_bb)
        if num_cores > 1 and B >= 2 * num_cores:
            block_b = min(block_b, pl.cdiv(B, num_cores))  # shard batch on TCs
        if 8 <= block_b < B:
            block_b = (block_b // 8) * 8       # sublane-aligned 2-D out blocks
    block_b = max(1, min(block_b, B))
    grid_b = pl.cdiv(B, block_b)               # partial last block handled by Pallas

    # 2-D (B, dim) output slab (token axis squeezed) when the block satisfies
    # the (8,128)-or-full rule; otherwise fall back to a 3-D (bb,1,dim) block.
    out_2d = (block_b == B) or (block_b % 8 == 0)
    if out_2d:
        out_shape = jax.ShapeDtypeStruct((B, dim), out_dtype)
        out_spec = pl.BlockSpec((block_b, dim), lambda b: (b, 0))
    else:
        out_shape = jax.ShapeDtypeStruct((B, 1, dim), out_dtype)
        out_spec = pl.BlockSpec((block_b, 1, dim), lambda b: (b, 0, 0))

    # VMEM budget: double-buffered x slab + ~7 live f32 temporaries + weights.
    vmem_est = (2 * block_b * row_elems * itemsize
                + 7 * block_b * row_elems * 4
                + 4 * block_b * dim * 4
                + 4 * (2 * C * C + C * dim + dim) * 4)
    vmem_limit = int(min(64 << 20, max(32 << 20, 2 * vmem_est)))

    out = pl.pallas_call(
        functools.partial(_mcross_attention_kernel, N),
        out_shape=out_shape,
        grid=(grid_b,),
        in_specs=[
            pl.BlockSpec((block_b, n_pad, C), lambda b: (b, 0, 0)),  # x slab
            pl.BlockSpec((C, C), lambda b: (0, 0)),      # fused scale*wq^T wk
            pl.BlockSpec((C, C), lambda b: (0, 0)),      # head broadcast-sum
            pl.BlockSpec((C, dim), lambda b: (0, 0)),    # fused wv / proj
            pl.BlockSpec((1, dim), lambda b: (0, 0)),    # proj bias
        ],
        out_specs=out_spec,
        compiler_params=pltpu.CompilerParams(
            dimension_semantics=("parallel",),
            vmem_limit_bytes=vmem_limit),
    )(x_in, bdat_in, bcast, m_fused, bp2)
    return out.reshape(B, 1, dim)


def mcross_attention(x, wq, wk, wv, wp, bp, *, num_heads, **kwargs):
    """Convenience wrapper: fuse weights then run the kernel."""
    fused = fuse_mcross_weights(wq, wk, wv, wp, bp, num_heads=num_heads)
    return mcross_attention_fused(x, *fused, **kwargs)


def _reference(x, wq, wk, wv, wp, bp, *, num_heads):
    """Pure-JAX transcription of the PyTorch forward."""
    B, N, C = x.shape
    hd = C // num_heads
    scale = float(hd) ** -0.5
    xr = x.reshape(B, N, num_heads, hd)
    q = jnp.einsum('bnhd,ed->bhne', xr[:, 0:1], wq)   # (B, H, 1, dim)
    k = jnp.einsum('bnhd,ed->bhne', xr, wk)           # (B, H, N, dim)
    v = jnp.einsum('bnhd,ed->bhne', xr, wv)           # (B, H, N, dim)
    attn = jnp.einsum('bhid,bhjd->bhij', q, k) * scale
    attn = jax.nn.softmax(attn, axis=-1)
    o = jnp.einsum('bhij,bhjd->bhid', attn, v)        # (B, H, 1, dim)
    o = o.transpose(0, 2, 1, 3).reshape(B, 1, num_heads * C)
    return jnp.einsum('bne,oe->bno', o, wp) + bp.reshape(1, 1, -1)


if __name__ == "__main__":
    num_heads, dim = 8, 32
    hd = dim // num_heads

    key = jax.random.PRNGKey(0)
    kx1, kx2, kx3, kx4, kq, kk, kv, kp_, kb = jax.random.split(key, 9)
    # PyTorch Linear weight layout: (out_features, in_features)
    wq = 0.05 * jax.random.normal(kq, (dim, hd), dtype=jnp.float32)
    wk = 0.05 * jax.random.normal(kk, (dim, hd), dtype=jnp.float32)
    wv = 0.05 * jax.random.normal(kv, (dim, hd), dtype=jnp.float32)
    wp = 0.05 * jax.random.normal(kp_, (dim, dim * num_heads), dtype=jnp.float32)
    bp = 0.05 * jax.random.normal(kb, (dim,), dtype=jnp.float32)

    # Weight fusion computed ONCE and reused for every call below.
    fused = jax.block_until_ready(
        fuse_mcross_weights(wq, wk, wv, wp, bp, num_heads=num_heads))

    def check(x_ref_in, out, atol, rtol):
        ref = _reference(x_ref_in, wq, wk, wv, wp, bp, num_heads=num_heads)
        assert out.shape == ref.shape, (out.shape, ref.shape)
        out32 = out.astype(jnp.float32)
        assert jnp.allclose(out32, ref, atol=atol, rtol=rtol), \
            float(jnp.max(jnp.abs(out32 - ref)))

    # Case 1: B=4, N=8, f32 — one fat grid step, 2-D output slab.
    x1 = jax.random.normal(kx1, (4, 8, dim), dtype=jnp.float32)
    out1 = jax.block_until_ready(mcross_attention_fused(x1, *fused))
    check(x1, out1, 2e-3, 2e-3)

    # Case 2: B=5 with forced block_b=2 — partial last batch block (no jnp.pad)
    # and the 3-D output fallback path.
    x2 = jax.random.normal(kx2, (5, 8, dim), dtype=jnp.float32)
    out2 = jax.block_until_ready(mcross_attention_fused(x2, *fused, block_b=2))
    check(x2, out2, 2e-3, 2e-3)

    # Case 3: N=5 (not a multiple of 8) — padded-token softmax mask path.
    x3 = jax.random.normal(kx3, (4, 5, dim), dtype=jnp.float32)
    out3 = jax.block_until_ready(mcross_attention_fused(x3, *fused))
    check(x3, out3, 2e-3, 2e-3)

    # Case 4: bf16 input stream (half the HBM traffic); softmax stays f32.
    x4 = jax.random.normal(kx4, (4, 8, dim), dtype=jnp.float32)
    out4 = jax.block_until_ready(
        mcross_attention_fused(x4.astype(jnp.bfloat16), *fused))
    check(x4, out4, 2e-2, 2e-2)

    print("KERNEL_OK")
</pallas_src>

<mosaic_0001>
module attributes {stable_mosaic.version = 11 : i64} {
  func.func @_mcross_attention_kernel(%arg0: i32, %arg1: memref<4x8x32xf32, #tpu.memory_space<vmem>>, %arg2: memref<32x32xf32, #tpu.memory_space<vmem>>, %arg3: memref<32x32xf32, #tpu.memory_space<vmem>>, %arg4: memref<32x32xf32, #tpu.memory_space<vmem>>, %arg5: memref<1x32xf32, #tpu.memory_space<vmem>>, %arg6: memref<4x32xf32, #tpu.memory_space<vmem>>) attributes {dimension_semantics = [#tpu.dimension_semantics<parallel>], iteration_bounds = array<i64: 1>, scalar_prefetch = 0 : i64, scratch_operands = 0 : i64, tpu.core_type = #tpu.core_type<tc>, window_params = [{transform_indices = @transform_0, window_bounds = array<i64: 4, 8, 32>}, {pipeline_mode = #tpu.pipeline_mode<synchronous>, transform_indices = @transform_1, window_bounds = array<i64: 32, 32>}, {pipeline_mode = #tpu.pipeline_mode<synchronous>, transform_indices = @transform_2, window_bounds = array<i64: 32, 32>}, {pipeline_mode = #tpu.pipeline_mode<synchronous>, transform_indices = @transform_3, window_bounds = array<i64: 32, 32>}, {pipeline_mode = #tpu.pipeline_mode<synchronous>, transform_indices = @transform_4, window_bounds = array<i64: 1, 32>}, {transform_indices = @transform_5, window_bounds = array<i64: 4, 32>}]} {
    %c0 = arith.constant 0 : index
    %c0_0 = arith.constant 0 : index
    %c0_1 = arith.constant 0 : index
    %0 = vector.load %arg1[%c0, %c0_0, %c0_1] : memref<4x8x32xf32, #tpu.memory_space<vmem>>, vector<4x8x32xf32>
    %1 = vector.shape_cast %0 : vector<4x8x32xf32> to vector<32x32xf32>
    %c0_2 = arith.constant 0 : index
    %c0_3 = arith.constant 0 : index
    %2 = vector.load %arg2[%c0_2, %c0_3] : memref<32x32xf32, #tpu.memory_space<vmem>>, vector<32x32xf32>
    %cst = arith.constant dense<0.000000e+00> : vector<32x32xf32>
    %3 = tpu.matmul %1, %2, %cst {dimension_numbers = #tpu.dot_dimension_numbers<[1], [0], [0], [1], [0, 0, 1, 1], [], []>} : vector<32x32xf32>, vector<32x32xf32>, vector<32x32xf32> -> vector<32x32xf32>
    %4 = vector.shape_cast %3 : vector<32x32xf32> to vector<4x8x32xf32>
    %5 = vector.extract_strided_slice %0 {offsets = [0, 0, 0], sizes = [4, 1, 32], strides = [1, 1, 1]} : vector<4x8x32xf32> to vector<4x1x32xf32>
    %6 = vector.broadcast %5 : vector<4x1x32xf32> to vector<4x8x32xf32>
    %7 = arith.mulf %4, %6 : vector<4x8x32xf32>
    %8 = vector.shape_cast %7 : vector<4x8x32xf32> to vector<32x32xf32>
    %c0_4 = arith.constant 0 : index
    %c0_5 = arith.constant 0 : index
    %9 = vector.load %arg3[%c0_4, %c0_5] : memref<32x32xf32, #tpu.memory_space<vmem>>, vector<32x32xf32>
    %cst_6 = arith.constant dense<0.000000e+00> : vector<32x32xf32>
    %10 = tpu.matmul %8, %9, %cst_6 {dimension_numbers = #tpu.dot_dimension_numbers<[1], [0], [0], [1], [0, 0, 1, 1], [], []>} : vector<32x32xf32>, vector<32x32xf32>, vector<32x32xf32> -> vector<32x32xf32>
    %11 = vector.shape_cast %10 : vector<32x32xf32> to vector<4x8x32xf32>
    %cst_7 = arith.constant dense<0xFF800000> : vector<4x32xf32>
    %12 = vector.multi_reduction <maximumf>, %11, %cst_7 [1] : vector<4x8x32xf32> to vector<4x32xf32>
    %13 = vector.shape_cast %12 : vector<4x32xf32> to vector<4x1x32xf32>
    %14 = vector.broadcast %13 : vector<4x1x32xf32> to vector<4x8x32xf32>
    %15 = arith.subf %11, %14 : vector<4x8x32xf32>
    %16 = math.exp %15 : vector<4x8x32xf32>
    %cst_8 = arith.constant dense<0.000000e+00> : vector<4x32xf32>
    %17 = vector.multi_reduction <add>, %16, %cst_8 [1] : vector<4x8x32xf32> to vector<4x32xf32>
    %18 = vector.shape_cast %17 : vector<4x32xf32> to vector<4x1x32xf32>
    %19 = tpu.reciprocal %18 {approx = true} : vector<4x1x32xf32> -> vector<4x1x32xf32>
    %20 = vector.broadcast %19 : vector<4x1x32xf32> to vector<4x8x32xf32>
    %21 = arith.mulf %16, %20 : vector<4x8x32xf32>
    %22 = arith.mulf %21, %0 : vector<4x8x32xf32>
    %cst_9 = arith.constant dense<0.000000e+00> : vector<4x32xf32>
    %23 = vector.multi_reduction <add>, %22, %cst_9 [1] : vector<4x8x32xf32> to vector<4x32xf32>
    %c0_10 = arith.constant 0 : index
    %c0_11 = arith.constant 0 : index
    %24 = vector.load %arg4[%c0_10, %c0_11] : memref<32x32xf32, #tpu.memory_space<vmem>>, vector<32x32xf32>
    %cst_12 = arith.constant dense<0.000000e+00> : vector<4x32xf32>
    %25 = tpu.matmul %23, %24, %cst_12 {dimension_numbers = #tpu.dot_dimension_numbers<[1], [0], [0], [1], [0, 0, 1, 1], [], []>} : vector<4x32xf32>, vector<32x32xf32>, vector<4x32xf32> -> vector<4x32xf32>
    %c0_13 = arith.constant 0 : index
    %c0_14 = arith.constant 0 : index
    %26 = vector.load %arg5[%c0_13, %c0_14] : memref<1x32xf32, #tpu.memory_space<vmem>>, vector<1x32xf32>
    %27 = vector.broadcast %26 : vector<1x32xf32> to vector<4x32xf32>
    %28 = arith.addf %25, %27 : vector<4x32xf32>
    %c0_15 = arith.constant 0 : index
    %c0_16 = arith.constant 0 : index
    %29 = vector.load %arg6[%c0_15, %c0_16] : memref<4x32xf32, #tpu.memory_space<vmem>>, vector<4x32xf32>
    tpu.vector_store %arg6[%c0_15, %c0_16], %28 {strides = array<i32>} : memref<4x32xf32, #tpu.memory_space<vmem>>, vector<4x32xf32>,
    return
  }
  func.func @transform_0(%arg0: i32) -> (i32, i32, i32) {
    %c0_i32 = arith.constant 0 : i32
    %c0_i32_0 = arith.constant 0 : i32
    %c0_i32_1 = arith.constant 0 : i32
    return %arg0, %c0_i32, %c0_i32_0 : i32, i32, i32
  }
  func.func @transform_1(%arg0: i32) -> (i32, i32) {
    %c0_i32 = arith.constant 0 : i32
    %c0_i32_0 = arith.constant 0 : i32
    %c0_i32_1 = arith.constant 0 : i32
    return %c0_i32, %c0_i32_0 : i32, i32
  }
  func.func @transform_2(%arg0: i32) -> (i32, i32) {
    %c0_i32 = arith.constant 0 : i32
    %c0_i32_0 = arith.constant 0 : i32
    %c0_i32_1 = arith.constant 0 : i32
    return %c0_i32, %c0_i32_0 : i32, i32
  }
  func.func @transform_3(%arg0: i32) -> (i32, i32) {
    %c0_i32 = arith.constant 0 : i32
    %c0_i32_0 = arith.constant 0 : i32
    %c0_i32_1 = arith.constant 0 : i32
    return %c0_i32, %c0_i32_0 : i32, i32
  }
  func.func @transform_4(%arg0: i32) -> (i32, i32) {
    %c0_i32 = arith.constant 0 : i32
    %c0_i32_0 = arith.constant 0 : i32
    %c0_i32_1 = arith.constant 0 : i32
    return %c0_i32, %c0_i32_0 : i32, i32
  }
  func.func @transform_5(%arg0: i32) -> (i32, i32) {
    %c0_i32 = arith.constant 0 : i32
    %c0_i32_0 = arith.constant 0 : i32
    return %arg0, %c0_i32 : i32, i32
  }
}

</mosaic_0001>

<bundles_post_ra>
// kernel: tpu_custom_call.1
= control target key start
LH: loop header
LB: loop body
LE: loop exit
PB: predicated region body
PF: predicated region fallthrough
CT: control target
= control target key end

     0   :  { %10 = vsyncpa [#allocation3], 0  ;;  %s929_s0 = inlined_call_operand.hbm [shape: f32[4,8,32], index: 0, kind: input, shape index: {}]   ;;  %s930_s1 = inlined_call_operand.hbm [shape: f32[32,32], index: 1, kind: input, shape index: {}]   ;;  %s931_s2 = inlined_call_operand.hbm [shape: f32[32,32], index: 2, kind: input, shape index: {}]   ;;  %s932_s3 = inlined_call_operand.hbm [shape: f32[32,32], index: 3, kind: input, shape index: {}]   ;;  %s933_s4 = inlined_call_operand.vmem [shape: f32[1,32], index: 4, kind: input, shape index: {}]   ;;  %s934_s5 = inlined_call_operand.hbm [shape: f32[4,32], index: 5, kind: output, shape index: {}]  }
   0x1   :  { %11 = vsyncpa [#allocation6], 0 }
   0x2   :  { %12 = vsyncpa [#allocation9], 0 }
   0x3   :  { %13 = vsyncpa [#allocation4], 0  ;;  %s759_s18 = smov [#allocation5]   ;;  %s760_s20 = smov [#allocation2]  }
   0x4   :  { %s31_s19 = sshll.u32 %s759_s18, 4  ;;  %s19_s21 = sshll.u32 %s760_s20, 4  ;;  %s32_s19 = int_to_ptr.vmem [resolvable:$true] %s31_s19  ;;  %s799_s21 = int_to_ptr.vmem [resolvable:$true] %s19_s21 }
   0x5   :  { %s641_s24 = scalar_lea.hbm %s930_s1, 512 }
   0x6   :  { %p642_p0 = scmp.ne.s32.totalorder %s930_s1, %s641_s24  ;;  %p645_p1 = scmp.lt.u32.totalorder %s641_s24, %s930_s1 }
   0x8   :  { %p647_p2 = pnand %p645_p1, %p642_p0 }
   0xa   :  { %650 = shalt.err (!%p647_p2)
}
   0xb   :  { %s651_s29 = scalar_lea.vmem %s32_s19, 512  ;;  %p656_p4 = scmp.lt.s32.totalorder %s32_s19, %s32_s19 }
   0xc   :  { %p652_p3 = scmp.ne.s32.totalorder %s32_s19, %s651_s29  ;;  %p657_p5 = scmp.lt.s32.totalorder %s651_s29, %s651_s29 }
   0xe   :  { %p658_p6 = por %p657_p5, %p656_p4 }
  0x10   :  { %p659_p7 = pnand %p658_p6, %p652_p3 }
  0x12   :  { %662 = shalt.err (!%p659_p7)
}
  0x13   :  { %s761_s30 = smov 128   ;;  %s762_s6 = smov 8  }
  0x14   :  { %37 = dma.hbm_to_vmem [thread:$0]  %s930_s1, 512, %s32_s19, [#allocation6], %s761_s30, %s761_s30, %s762_s6  }
  0x15   :  { %s663_s11 = scalar_lea.hbm %s929_s0, 512 }
  0x16   :  { %p664_p8 = scmp.ne.s32.totalorder %s929_s0, %s663_s11  ;;  %p667_p9 = scmp.lt.u32.totalorder %s663_s11, %s929_s0 }
  0x18   :  { %p669_p10 = pnand %p667_p9, %p664_p8 }
  0x1a   :  { %672 = shalt.err (!%p669_p10)
}
  0x1b   :  { %s673_s16 = scalar_lea.vmem %s799_s21, 512  ;;  %p678_p12 = scmp.lt.s32.totalorder %s799_s21, %s799_s21 }
  0x1c   :  { %p674_p11 = scmp.ne.s32.totalorder %s799_s21, %s673_s16  ;;  %p679_p13 = scmp.lt.s32.totalorder %s673_s16, %s673_s16 }
  0x1e   :  { %p680_p0 = por %p679_p13, %p678_p12 }
  0x20   :  { %p681_p1 = pnand %p680_p0, %p674_p11 }
  0x22   :  { %684 = shalt.err (!%p681_p1)
}
  0x23   :  { %25 = dma.hbm_to_vmem [thread:$0]  %s929_s0, 512, %s799_s21, [#allocation3], %s761_s30, %s761_s30, %s762_s6  }
  0x24   :  { %s763_s18 = smov [#allocation7]   ;;  %s764_s20 = smov [#allocation8]  }
  0x25   :  { %s43_s19 = sshll.u32 %s763_s18, 4  ;;  %s55_s22 = sshll.u32 %s764_s20, 4  ;;  %s44_s19 = int_to_ptr.vmem [resolvable:$true] %s43_s19  ;;  %s836_s22 = int_to_ptr.vmem [resolvable:$true] %s55_s22 }
  0x26   :  { %s685_s25 = scalar_lea.hbm %s931_s2, 512 }
  0x27   :  { %p686_p2 = scmp.ne.s32.totalorder %s931_s2, %s685_s25  ;;  %p689_p3 = scmp.lt.u32.totalorder %s685_s25, %s931_s2 }
  0x29   :  { %p691_p4 = pnand %p689_p3, %p686_p2 }
  0x2b   :  { %694 = shalt.err (!%p691_p4)
}
  0x2c   :  { %s695_s0 = scalar_lea.vmem %s44_s19, 512  ;;  %p700_p6 = scmp.lt.s32.totalorder %s44_s19, %s44_s19 }
  0x2d   :  { %p696_p5 = scmp.ne.s32.totalorder %s44_s19, %s695_s0  ;;  %p701_p7 = scmp.lt.s32.totalorder %s695_s0, %s695_s0 }
  0x2f   :  { %p702_p8 = por %p701_p7, %p700_p6 }
  0x31   :  { %p703_p9 = pnand %p702_p8, %p696_p5 }
  0x33   :  { %706 = shalt.err (!%p703_p9)
}
  0x34   :  { %49 = dma.hbm_to_vmem [thread:$0]  %s931_s2, 512, %s44_s19, [#allocation6], %s761_s30, %s761_s30, %s762_s6  }
  0x35   :  { %s707_s10 = scalar_lea.hbm %s932_s3, 512 }
  0x36   :  { %p708_p10 = scmp.ne.s32.totalorder %s932_s3, %s707_s10  ;;  %p711_p11 = scmp.lt.u32.totalorder %s707_s10, %s932_s3 }
  0x38   :  { %p713_p12 = pnand %p711_p11, %p708_p10 }
  0x3a   :  { %716 = shalt.err (!%p713_p12)
}
  0x3b   :  { %s717_s15 = scalar_lea.vmem %s836_s22, 512  ;;  %p722_p0 = scmp.lt.s32.totalorder %s836_s22, %s836_s22 }
  0x3c   :  { %p718_p13 = scmp.ne.s32.totalorder %s836_s22, %s717_s15  ;;  %p723_p1 = scmp.lt.s32.totalorder %s717_s15, %s717_s15 }
  0x3e   :  { %p724_p2 = por %p723_p1, %p722_p0 }
  0x40   :  { %p725_p3 = pnand %p724_p2, %p718_p13 }
  0x42   :  { %728 = shalt.err (!%p725_p3)
}
  0x43   :  { %61 = dma.hbm_to_vmem [thread:$0]  %s932_s3, 512, %s836_s22, [#allocation9], %s761_s30, %s761_s30, %s762_s6  }
  0x44   :  { %751 = dma.done.wait [#allocation3], 512  }
  0x45   :  { %752 = vsyncadd [#allocation3], 4294966784 }
  0x46   :  { %753 = dma.done.wait [#allocation6], 1024  }
  0x47   :  { %754 = vsyncadd [#allocation6], 4294966272 }
  0x48   :  { %755 = dma.done.wait [#allocation9], 512  }
  0x49   :  { %756 = vsyncadd [#allocation9], 4294966784  ;;  %vm84_vm0 = vcmask 261120   ;;  %v80_v0 = vld [vmem:[#allocation5] sm:$0xff]  ;;  %v81_v1 = vld [vmem:[#allocation5 + $0x8] sm:$0xff]  ;;  %v182_v16 = vlaneseq  ;;  %v765_v34 = vmov 0.0|0.0  }
  0x4a   :  { %v82_v2 = vld [vmem:[#allocation5 + $0x10] sm:$0xff]  ;;  %v593_v3 = vpack.c.bf16 %v81_v1, %v80_v0  ;;  %v83_v4 = vld [vmem:[#allocation5 + $0x18] sm:$0xff]  ;;  %v873_v5 = vld [vmem:[#allocation2] sm:$0xff]  ;;  %vm766_vm1 = vmmov 0   ;;  %v767_v37 = vmov 0.0   ;;  %vm426_vm2 = vcmask 1041409  }
  0x4b   :  { %v597_v6 = vpack.c.bf16 %v83_v4, %v82_v2  ;;  %562 = vmatprep.mubr.msk.f32.mxu0 %vm84_vm0, %v873_v5  ;;  %v202_v7 = vld [vmem:[#allocation7] sm:$0xff]  ;;  %v203_v8 = vld [vmem:[#allocation7 + $0x8] sm:$0xff]  ;;  %v879_v11 = vld [vmem:[#allocation2 + $0x10] sm:$0xff]  ;;  %v183_v17 = vshrl.u32 %v182_v16, 7  ;;  %vm428_vm3 = vcmask 1042434   ;;  %vm430_vm4 = vcmask 1043459  }
  0x4c   :  { %594 = vmatprep.subr.bf16.mxu0 %v593_v3  ;;  %v601_v9 = vpack.c.bf16 %v203_v8, %v202_v7  ;;  %v877_v10 = vld [vmem:[#allocation2 + $0x8] sm:$0xff]  ;;  %v885_v12 = vld [vmem:[#allocation2 + $0x18] sm:$0xff]  ;;  %v204_v13 = vld [vmem:[#allocation7 + $0x10] sm:$0xff]  ;;  %s768_s6 = smov [#allocation10]   ;;  %vm504_vm5 = vcmask 257024  }
  0x4d   :  { %596 = vmatpush3.bf16.msra.mxu0 %v593_v3  ;;  %v205_v14 = vld [vmem:[#allocation7 + $0x18] sm:$0xff]  ;;  %v184_v18 = vsub.s32 0, %v183_v17  ;;  %v411_v31 = vld [vmem:[#allocation8] sm:$0xff]  ;;  %v412_v32 = vld [vmem:[#allocation8 + $0x8] sm:$0xff]  ;;  %s512_s1 = sshll.u32 %s768_s6, 4  ;;  %s513_s1 = int_to_ptr.vmem [resolvable:$true] %s512_s1 }
  0x4e   :  { %598 = vmatprep.subr.bf16.mxu0 %v597_v6  ;;  %602 = vmatprep.subr.bf16.mxu1 %v601_v9  ;;  %v605_v15 = vpack.c.bf16 %v205_v14, %v204_v13  ;;  %v413_v33 = vld [vmem:[#allocation8 + $0x10] sm:$0xff]  ;;  %v610_v35 = vpack.c.bf16 %v412_v32, %v411_v31  ;;  %v414_v36 = vld [vmem:[#allocation8 + $0x18] sm:$0xff]  ;;  %s729_s17 = scalar_lea.vmem %s513_s1, 64  ;;  %p734_p5 = scmp.lt.s32.totalorder %s513_s1, %s513_s1 }
  0x4f   :  { %604 = vmatpush3.bf16.msra.mxu1 %v601_v9  ;;  %v185_v19 = vrot.slane %v873_v5, %v184_v18  ;;  %v189_v20 = vrot.slane %v877_v10, %v184_v18  ;;  %v193_v24 = vrot.slane %v879_v11, %v184_v18  ;;  %v197_v26 = vrot.slane %v885_v12, %v184_v18  ;;  %p730_p4 = scmp.ne.s32.totalorder %s513_s1, %s729_s17  ;;  %p735_p6 = scmp.lt.s32.totalorder %s729_s17, %s729_s17 }
  0x50   :  { %606 = vmatprep.subr.bf16.mxu1 %v605_v15  ;;  %v613_v38 = vpack.c.bf16 %v414_v36, %v413_v33 }
  0x51   :  { %600 = vmatpush3.bf16.msra.mxu0 %v597_v6  ;;  %p736_p7 = por %p735_p6, %p734_p5 }
  0x52   :  { %609 = vmatprep.subr.bf16.mxu0 %v765_v34 }
  0x53   :  { %608 = vmatpush3.bf16.msra.mxu1 %v605_v15  ;;  %p737_p8 = pnand %p736_p7, %p730_p4 }
  0x54   :  { %563 = vmatmul.mubr.msk.f32.vlgmr.msra.gmra.mrb[0].mxu0 %vm84_vm0, %v877_v10 }
  0x55   :  { %565 = vmatprep.mubr.msk.f32.mxu0 %vm84_vm0, %v879_v11  ;;  %611 = vmatpush3.bf16.msra.mxu0 %v610_v35 }
  0x56   :  { %612 = vmatprep.subr.bf16.mxu0 %v765_v34 }
  0x58   :  { %566 = vmatmul.mubr.msk.f32.gmra.mrb[2].mxu0 %vm84_vm0, %v885_v12 }
  0x59   :  { %590 = vmatprep.mubr.msk.f32.mxu0 %vm766_vm1, %v767_v37  ;;  %614 = vmatpush3.bf16.msra.mxu0 %v613_v38 }
 0x127   :  { %v564_v21 = vpop.f32.mrb[0].mxu0 }
 0x128   :  { %v163_v22 = vpop.f32.mrb[1].mxu0  ;;  %v199_v25 = vmul.f32 %v564_v21, %v189_v20 }
 0x129   :  { %v198_v23 = vmul.f32 %v185_v19, %v163_v22 }
 0x12b   :  { %v567_v27 = vpop.f32.mrb[2].mxu0  ;;  %576 = vmatprep.mubr.msk.f32.mxu1 %vm84_vm0, %v198_v23 }
 0x12c   :  { %v173_v28 = vpop.f32.mrb[3].mxu0  ;;  %577 = vmatmul.mubr.msk.f32.vlgmr.msra.gmra.mrb[0].mxu1 %vm84_vm0, %v199_v25  ;;  %v201_v30 = vmul.f32 %v567_v27, %v197_v26 }
 0x12d   :  { %v200_v29 = vmul.f32 %v193_v24, %v173_v28 }
 0x12f   :  { %579 = vmatprep.mubr.msk.f32.mxu1 %vm84_vm0, %v200_v29 }
 0x130   :  { %580 = vmatmul.mubr.msk.f32.gmra.mrb[2].mxu1 %vm84_vm0, %v201_v30 }
 0x1ff   :  { %v578_v39 = vpop.f32.mrb[0].mxu1 }
 0x200   :  { %v310_v40 = vsel %vm84_vm0, %v578_v39, -inf  ;;  %v284_v41 = vpop.f32.mrb[1].mxu1 }
 0x201   :  { %v311_v42 = vrot.slane %v310_v40, 4  ;;  %v303_v43 = vsel %vm84_vm0, %v284_v41, -inf }
 0x202   :  { %v304_v44 = vrot.slane %v303_v43, 4 }
 0x203   :  { %v312_v45 = vmax.f32 %v310_v40, %v311_v42  ;;  %v581_v46 = vpop.f32.mrb[2].mxu1 }
 0x204   :  { %v305_v47 = vmax.f32 %v303_v43, %v304_v44  ;;  %v324_v48 = vsel %vm84_vm0, %v581_v46, -inf  ;;  %v294_v49 = vpop.f32.mrb[3].mxu1 }
 0x205   :  { %v313_v50 = vrot.slane %v312_v45, 2  ;;  %v325_v51 = vrot.slane %v324_v48, 4  ;;  %v317_v52 = vsel %vm84_vm0, %v294_v49, -inf }
 0x206   :  { %v306_v53 = vrot.slane %v305_v47, 2  ;;  %v318_v54 = vrot.slane %v317_v52, 4 }
 0x207   :  { %v314_v55 = vmax.f32 %v312_v45, %v313_v50  ;;  %v326_v56 = vmax.f32 %v324_v48, %v325_v51 }
 0x208   :  { %v307_v57 = vmax.f32 %v305_v47, %v306_v53  ;;  %v319_v58 = vmax.f32 %v317_v52, %v318_v54 }
 0x209   :  { %v315_v59 = vrot.slane %v314_v55, 1  ;;  %v327_v60 = vrot.slane %v326_v56, 2 }
 0x20a   :  { %v308_v61 = vrot.slane %v307_v57, 1  ;;  %v320_v62 = vrot.slane %v319_v58, 2 }
 0x20b   :  { %v316_v63 = vmax.f32 %v314_v55, %v315_v59  ;;  %v328_v0 = vmax.f32 %v326_v56, %v327_v60 }
 0x20c   :  { %v309_v1 = vmax.f32 %v307_v57, %v308_v61  ;;  %v321_v2 = vmax.f32 %v319_v58, %v320_v62 }
 0x20d   :  { %v332_v3 = vsub.f32 %v578_v39, %v316_v63  ;;  %v329_v4 = vrot.slane %v328_v0, 1 }
 0x20e   :  { %v331_v6 = vsub.f32 %v284_v41, %v309_v1  ;;  %v322_v7 = vrot.slane %v321_v2, 1 }
 0x20f   :  { %v337_v8 = vmul.f32 1.442695, %v332_v3  ;;  %v330_v9 = vmax.f32 %v328_v0, %v329_v4 }
 0x210   :  { %v335_v13 = vmul.f32 1.442695, %v331_v6  ;;  %v323_v14 = vmax.f32 %v321_v2, %v322_v7 }
 0x211   :  { %625 = vpow2.f32 %v337_v8  ;;  %v334_v15 = vsub.f32 %v581_v46, %v330_v9 }
 0x212   :  { %627 = vpow2.f32 %v335_v13  ;;  %v333_v16 = vsub.f32 %v294_v49, %v323_v14 }
 0x213   :  { %v341_v17 = vmul.f32 1.442695, %v334_v15 }
 0x214   :  { %v339_v18 = vmul.f32 1.442695, %v333_v16 }
 0x215   :  { %629 = vpow2.f32 %v341_v17 }
 0x216   :  { %631 = vpow2.f32 %v339_v18 }
 0x21b   :  { %v626_v19 = vpop.eup %625 }
 0x21c   :  { %v628_v20 = vpop.eup %627  ;;  %v350_v21 = vsel %vm84_vm0, %v626_v19, 0.0 }
 0x21d   :  { %v351_v22 = vrot.slane %v350_v21, 4  ;;  %v343_v23 = vsel %vm84_vm0, %v628_v20, 0.0 }
 0x21e   :  { %v344_v24 = vrot.slane %v343_v23, 4 }
 0x21f   :  { %v630_v25 = vpop.eup %629  ;;  %v352_v26 = vadd.f32 %v351_v22, %v350_v21 }
 0x220   :  { %v632_v27 = vpop.eup %631  ;;  %v345_v28 = vadd.f32 %v344_v24, %v343_v23  ;;  %v364_v29 = vsel %vm84_vm0, %v630_v25, 0.0 }
 0x221   :  { %v353_v30 = vrot.slane %v352_v26, 2  ;;  %v365_v31 = vrot.slane %v364_v29, 4  ;;  %v357_v32 = vsel %vm84_vm0, %v632_v27, 0.0 }
 0x222   :  { %v346_v33 = vrot.slane %v345_v28, 2  ;;  %v358_v34 = vrot.slane %v357_v32, 4 }
 0x223   :  { %v354_v35 = vadd.f32 %v353_v30, %v352_v26  ;;  %v366_v36 = vadd.f32 %v365_v31, %v364_v29  ;;  %v531_v30 = vld [vmem:[%s933_s4] ss:$0 sm:$0xff] }
 0x224   :  { %v347_v37 = vadd.f32 %v346_v33, %v345_v28  ;;  %v359_v38 = vadd.f32 %v358_v34, %v357_v32 }
 0x225   :  { %v355_v39 = vrot.slane %v354_v35, 1  ;;  %v367_v40 = vrot.slane %v366_v36, 2 }
 0x226   :  { %v348_v41 = vrot.slane %v347_v37, 1  ;;  %v360_v42 = vrot.slane %v359_v38, 2 }
 0x227   :  { %v356_v43 = vadd.f32 %v355_v39, %v354_v35  ;;  %v368_v44 = vadd.f32 %v367_v40, %v366_v36 }
 0x228   :  { %v349_v45 = vadd.f32 %v348_v41, %v347_v37  ;;  %v361_v46 = vadd.f32 %v360_v42, %v359_v38 }
 0x229   :  { %633 = vrcp.f32 %v356_v43  ;;  %v369_v47 = vrot.slane %v368_v44, 1 }
 0x22a   :  { %635 = vrcp.f32 %v349_v45  ;;  %v362_v48 = vrot.slane %v361_v46, 1 }
 0x22b   :  { %v370_v49 = vadd.f32 %v369_v47, %v368_v44 }
 0x22c   :  { %v363_v50 = vadd.f32 %v362_v48, %v361_v46 }
 0x22d   :  { %637 = vrcp.f32 %v370_v49 }
 0x22e   :  { %639 = vrcp.f32 %v363_v50 }
 0x233   :  { %v634_v51 = vpop.eup %633 }
 0x234   :  { %v636_v52 = vpop.eup %635  ;;  %v376_v53 = vmul.f32 %v634_v51, %v626_v19 }
 0x235   :  { %v375_v54 = vmul.f32 %v636_v52, %v628_v20 }
 0x236   :  { %v380_v55 = vmul.f32 %v376_v53, %v877_v10 }
 0x237   :  { %v638_v56 = vpop.eup %637  ;;  %v379_v57 = vmul.f32 %v375_v54, %v873_v5 }
 0x238   :  { %v640_v58 = vpop.eup %639  ;;  %v390_v59 = vsel %vm84_vm0, %v380_v55, 0.0  ;;  %v378_v60 = vmul.f32 %v638_v56, %v630_v25 }
 0x239   :  { %v391_v61 = vrot.slane %v390_v59, 4  ;;  %v383_v62 = vsel %vm84_vm0, %v379_v57, 0.0  ;;  %v377_v63 = vmul.f32 %v640_v58, %v632_v27 }
 0x23a   :  { %v384_v0 = vrot.slane %v383_v62, 4  ;;  %v382_v1 = vmul.f32 %v378_v60, %v885_v12 }
 0x23b   :  { %v392_v2 = vadd.f32 %v391_v61, %v390_v59  ;;  %v381_v3 = vmul.f32 %v377_v63, %v879_v11 }
 0x23c   :  { %v385_v4 = vadd.f32 %v384_v0, %v383_v62  ;;  %v404_v10 = vsel %vm84_vm0, %v382_v1, 0.0 }
 0x23d   :  { %v393_v6 = vrot.slane %v392_v2, 2  ;;  %v405_v7 = vrot.slane %v404_v10, 4  ;;  %v397_v5 = vsel %vm84_vm0, %v381_v3, 0.0 }
 0x23e   :  { %v386_v8 = vrot.slane %v385_v4, 2  ;;  %v398_v9 = vrot.slane %v397_v5, 4 }
 0x23f   :  { %v394_v13 = vadd.f32 %v393_v6, %v392_v2  ;;  %v406_v14 = vadd.f32 %v405_v7, %v404_v10 }
 0x240   :  { %v399_v15 = vadd.f32 %v398_v9, %v397_v5  ;;  %v387_v16 = vadd.f32 %v386_v8, %v385_v4 }
 0x241   :  { %v395_v17 = vrot.slane %v394_v13, 1  ;;  %v407_v18 = vrot.slane %v406_v14, 2 }
 0x242   :  { %v388_v19 = vrot.slane %v387_v16, 1  ;;  %v400_v12 = vrot.slane %v399_v15, 2 }
 0x243   :  { %v396_v20 = vadd.f32 %v395_v17, %v394_v13  ;;  %v408_v21 = vadd.f32 %v407_v18, %v406_v14 }
 0x244   :  { %v389_v11 = vadd.f32 %v388_v19, %v387_v16  ;;  %v401_v22 = vadd.f32 %v400_v12, %v399_v15 }
 0x245   :  { %v409_v23 = vrot.slane %v408_v21, 1 }
 0x246   :  { %v402_v24 = vrot.slane %v401_v22, 1  ;;  %v427_v25 = vsel %vm426_vm2, %v396_v20, %v389_v11 }
 0x247   :  { %v410_v27 = vadd.f32 %v409_v23, %v408_v21 }
 0x248   :  { %v403_v26 = vadd.f32 %v402_v24, %v401_v22 }
 0x24a   :  { %v429_v28 = vsel %vm428_vm3, %v403_v26, %v427_v25 }
 0x24b   :  { %v431_v29 = vsel %vm430_vm4, %v410_v27, %v429_v28 }
 0x24c   :  { %591 = vmatmul.mubr.msk.f32.vlgmr.msra.gmra.mrb[4].mxu0 %vm84_vm0, %v431_v29 }
 0x31f   :  { %v500_v31 = vpop.f32.mrb[4].mxu0 }
 0x320   :  { %v501_v32 = vadd.f32 %v531_v30, %v500_v31  ;;  %v592_v33 = vpop.f32.mrb[5].mxu0 }
 0x322   :  { %505 = vst.msk [vmem:[#allocation10] sm:$0xf] %vm504_vm5, %v501_v32 }
 0x323   :  { %740 = shalt.err (!%p737_p8)
}
 0x324   :  { %s741_s20 = scalar_lea.hbm %s934_s5, 64 }
 0x325   :  { %p742_p9 = scmp.ne.s32.totalorder %s934_s5, %s741_s20  ;;  %p745_p10 = scmp.lt.u32.totalorder %s741_s20, %s934_s5 }
 0x327   :  { %p747_p11 = pnand %p745_p10, %p742_p9 }
 0x329   :  { %750 = shalt.err (!%p747_p11)
}
 0x32a   :  { %515 = dma.vmem_to_hbm [thread:$0]  %s513_s1, 64, %s934_s5, [#allocation4]  }
 0x32b   :  { %757 = dma.done.wait [#allocation4], 64  }
 0x32c   :  { %758 = vsyncadd [#allocation4], 4294967232 }
 0x32d   :  { %519 = vsyncpa [#allocation3], 1 }
 0x32e   :  { %520 = vsyncpa [#allocation6], 1 }
 0x32f   :  { %521 = vsyncpa [#allocation9], 1 }
 0x330   :  { %522 = vsyncpa [#allocation4], 1 }

</bundles_post_ra>
